<compile_context>
chip_gen: v7x
topology: tpu7x:2x2x1
jax: 0.10.0
libtpu: 0.0.40
codegen_flags: <defaults>
</compile_context>

<pallas_src>
import functools

import jax
import jax.numpy as jnp
from jax.experimental import pallas as pl
from jax.experimental.pallas import tpu as pltpu

EPS = 1e-9


def _pnn_loss_kernel(mean_ref, logvar_ref, tgt_ref, loss_ref, acc_ref,
                     *, valid_rows, tile_b):
    pid = pl.program_id(0)

    @pl.when(pid == 0)
    def _():
        acc_ref[...] = jnp.zeros_like(acc_ref)

    # Cast to f32 in-register; HBM traffic stays at the input dtype (e.g. bf16).
    mean = mean_ref[...].astype(jnp.float32)     # (tb, d)
    logvar = logvar_ref[...].astype(jnp.float32) # (tb, d)
    tgt = tgt_ref[...].astype(jnp.float32)       # (tb, d)

    var_eps = jnp.exp(logvar) + EPS              # strictly positive
    a = mean - tgt
    quad = a * (a / var_eps)                     # elementwise quadratic term
    contrib = quad + jnp.log(var_eps)            # log|prod| == sum(log), fused

    if valid_rows is not None:
        # batch was zero-padded up to a tile multiple -> mask padded rows
        row = pid * tile_b + jax.lax.broadcasted_iota(jnp.int32, contrib.shape, 0)
        contrib = jnp.where(row < valid_rows, contrib, 0.0)

    acc_ref[...] = acc_ref[...] + jnp.sum(contrib)

    @pl.when(pid == pl.num_programs(0) - 1)
    def _():
        loss_ref[...] = acc_ref[...]


def _choose_tile_b(b, d, itemsize, max_tb, vmem_budget=8 * 1024 * 1024):
    if b <= max_tb:
        return b                                 # single full-extent block
    # 3 input tiles (mean, logvar, target), double-buffered by BlockSpec
    bytes_per_row = 3 * d * itemsize * 2
    cap = vmem_budget // max(bytes_per_row, 1)
    cap = max(16, (cap // 16) * 16)              # sublane-aligned (bf16-safe)
    return int(min(max_tb, cap))


def pnn_gaussian_loss(output, target, *, max_tb=512):
    """output: (b, 2d), target: (b, d); dtype f32 or bf16 -> loss (1,), f32."""
    b, d2 = output.shape
    d = d2 // 2
    assert d2 == 2 * d and target.shape == (b, d)

    # Split at the lane-aligned mean/logvar boundary in the wrapper.
    mean = output[:, :d]
    logvar = output[:, d:]

    tile_b = _choose_tile_b(b, d, jnp.dtype(output.dtype).itemsize, max_tb)
    b_pad = pl.cdiv(b, tile_b) * tile_b
    if b_pad != b:
        pad = ((0, b_pad - b), (0, 0))
        mean = jnp.pad(mean, pad)
        logvar = jnp.pad(logvar, pad)
        target = jnp.pad(target, pad)
        valid_rows = b
    else:
        valid_rows = None

    kernel = functools.partial(_pnn_loss_kernel,
                               valid_rows=valid_rows, tile_b=tile_b)

    loss = pl.pallas_call(
        kernel,
        out_shape=jax.ShapeDtypeStruct((1, 1), jnp.float32),
        grid=(b_pad // tile_b,),
        in_specs=[
            pl.BlockSpec((tile_b, d), lambda i: (i, 0)),
            pl.BlockSpec((tile_b, d), lambda i: (i, 0)),
            pl.BlockSpec((tile_b, d), lambda i: (i, 0)),
        ],
        out_specs=pl.BlockSpec((1, 1), lambda i: (0, 0)),
        scratch_shapes=[pltpu.VMEM((1, 1), jnp.float32)],
        compiler_params=pltpu.CompilerParams(
            dimension_semantics=("arbitrary",)),
    )(mean, logvar, target)

    # torch's python-sum over the (b, 1) column returns a shape-(1,) tensor
    return loss.reshape(1)


def _ref_loss(output, target):
    # numerically-safe equivalent of the torch formula (sum-of-logs form)
    d = output.shape[1] // 2
    mean = output[:, :d].astype(jnp.float32)
    logvar = output[:, d:].astype(jnp.float32)
    tgt = target.astype(jnp.float32)
    var_eps = jnp.exp(logvar) + EPS
    a = mean - tgt
    return jnp.sum(a * a / var_eps + jnp.log(var_eps)).reshape(1)


def _ref_loss_torch_exact(output, target):
    # bit-level mimic of the torch code (prod-then-log); overflows for large d
    d = output.shape[1] // 2
    mean = output[:, :d]
    var = jnp.exp(output[:, d:])
    a = mean - target
    b_ = a / (var + EPS)
    quad = jnp.sum(a * b_, axis=1)
    logdet = jnp.log(jnp.abs(jnp.prod(var + EPS, axis=1)))
    return jnp.sum(quad + logdet).reshape(1)


if __name__ == "__main__":
    key = jax.random.PRNGKey(0)
    k1, k2, k3, k4 = jax.random.split(key, 4)

    # shapes consistent with the module: batch=8, d=16 -> output (8, 32)
    b, d = 8, 16
    output = jax.random.normal(k1, (b, 2 * d), dtype=jnp.float32)
    target = jax.random.normal(k2, (b, d), dtype=jnp.float32)

    loss = pnn_gaussian_loss(output, target)
    jax.block_until_ready(loss)
    assert loss.shape == (1,)
    assert jnp.allclose(loss, _ref_loss(output, target), rtol=1e-5, atol=1e-5)
    assert jnp.allclose(loss, _ref_loss_torch_exact(output, target),
                        rtol=1e-4, atol=1e-4)

    # tiled + masked path (batch not a multiple of the tile, grid accumulation)
    b2 = 100
    out2 = jax.random.normal(k3, (b2, 2 * d), dtype=jnp.float32)
    tgt2 = jax.random.normal(k4, (b2, d), dtype=jnp.float32)
    loss2 = pnn_gaussian_loss(out2, tgt2, max_tb=16)
    jax.block_until_ready(loss2)
    assert jnp.allclose(loss2, _ref_loss(out2, tgt2), rtol=1e-5, atol=1e-5)

    # bf16 inputs: DMA bf16, compute in f32 inside the kernel
    loss_bf16 = pnn_gaussian_loss(output.astype(jnp.bfloat16),
                                  target.astype(jnp.bfloat16))
    jax.block_until_ready(loss_bf16)
    assert jnp.allclose(loss_bf16,
                        _ref_loss(output.astype(jnp.bfloat16),
                                  target.astype(jnp.bfloat16)),
                        rtol=1e-4, atol=1e-4)

    print("KERNEL_OK")
</pallas_src>

<mosaic_0001>
module attributes {stable_mosaic.version = 11 : i64} {
  func.func @_pnn_loss_kernel(%arg0: i32, %arg1: memref<8x16xf32, #tpu.memory_space<vmem>>, %arg2: memref<8x16xf32, #tpu.memory_space<vmem>>, %arg3: memref<8x16xf32, #tpu.memory_space<vmem>>, %arg4: memref<1x1xf32, #tpu.memory_space<vmem>>, %arg5: memref<1x1xf32, #tpu.memory_space<vmem>>) attributes {dimension_semantics = [#tpu.dimension_semantics<arbitrary>], iteration_bounds = array<i64: 1>, scalar_prefetch = 0 : i64, scratch_operands = 1 : i64, tpu.core_type = #tpu.core_type<tc>, window_params = [{transform_indices = @transform_0, window_bounds = array<i64: 8, 16>}, {transform_indices = @transform_1, window_bounds = array<i64: 8, 16>}, {transform_indices = @transform_2, window_bounds = array<i64: 8, 16>}, {pipeline_mode = #tpu.pipeline_mode<synchronous>, transform_indices = @transform_3, window_bounds = array<i64: 1, 1>}]} {
    %c0_i32 = arith.constant 0 : i32
    %0 = arith.cmpi eq, %arg0, %c0_i32 : i32
    %1 = arith.extui %0 : i1 to i32
    %c0_i32_0 = arith.constant 0 : i32
    %2 = arith.cmpi ne, %1, %c0_i32_0 : i32
    scf.if %2 {
      %cst_13 = arith.constant 0.000000e+00 : f32
      %25 = vector.broadcast %cst_13 : f32 to vector<1x1xf32>
      %c0_14 = arith.constant 0 : index
      %c0_15 = arith.constant 0 : index
      %26 = vector.load %arg5[%c0_14, %c0_15] : memref<1x1xf32, #tpu.memory_space<vmem>>, vector<1x1xf32>
      tpu.vector_store %arg5[%c0_14, %c0_15], %25 {strides = array<i32>} : memref<1x1xf32, #tpu.memory_space<vmem>>, vector<1x1xf32>,
    } else {
    }
    %c0 = arith.constant 0 : index
    %c0_1 = arith.constant 0 : index
    %3 = vector.load %arg1[%c0, %c0_1] : memref<8x16xf32, #tpu.memory_space<vmem>>, vector<8x16xf32>
    %c0_2 = arith.constant 0 : index
    %c0_3 = arith.constant 0 : index
    %4 = vector.load %arg2[%c0_2, %c0_3] : memref<8x16xf32, #tpu.memory_space<vmem>>, vector<8x16xf32>
    %c0_4 = arith.constant 0 : index
    %c0_5 = arith.constant 0 : index
    %5 = vector.load %arg3[%c0_4, %c0_5] : memref<8x16xf32, #tpu.memory_space<vmem>>, vector<8x16xf32>
    %6 = math.exp %4 : vector<8x16xf32>
    %cst = arith.constant 9.99999971E-10 : f32
    %7 = vector.broadcast %cst : f32 to vector<8x16xf32>
    %8 = arith.addf %6, %7 : vector<8x16xf32>
    %9 = arith.subf %3, %5 : vector<8x16xf32>
    %10 = arith.divf %9, %8 : vector<8x16xf32>
    %11 = arith.mulf %9, %10 : vector<8x16xf32>
    %12 = math.log %8 : vector<8x16xf32>
    %13 = arith.addf %11, %12 : vector<8x16xf32>
    %c0_6 = arith.constant 0 : index
    %c0_7 = arith.constant 0 : index
    %14 = vector.load %arg5[%c0_6, %c0_7] : memref<1x1xf32, #tpu.memory_space<vmem>>, vector<1x1xf32>
    %15 = vector.shape_cast %13 : vector<8x16xf32> to vector<1x8x16xf32>
    %cst_8 = arith.constant dense<0.000000e+00> : vector<1xf32>
    %16 = vector.multi_reduction <add>, %15, %cst_8 [1, 2] : vector<1x8x16xf32> to vector<1xf32>
    %17 = vector.shape_cast %16 : vector<1xf32> to vector<1x1x1xf32>
    %18 = vector.extract %17[0, 0, 0] : f32 from vector<1x1x1xf32>
    %19 = vector.broadcast %18 : f32 to vector<1x1xf32>
    %20 = arith.addf %14, %19 : vector<1x1xf32>
    %c0_9 = arith.constant 0 : index
    %c0_10 = arith.constant 0 : index
    %21 = vector.load %arg5[%c0_9, %c0_10] : memref<1x1xf32, #tpu.memory_space<vmem>>, vector<1x1xf32>
    tpu.vector_store %arg5[%c0_9, %c0_10], %20 {strides = array<i32>} : memref<1x1xf32, #tpu.memory_space<vmem>>, vector<1x1xf32>,
    %c0_i32_11 = arith.constant 0 : i32
    %22 = arith.cmpi eq, %arg0, %c0_i32_11 : i32
    %23 = arith.extui %22 : i1 to i32
    %c0_i32_12 = arith.constant 0 : i32
    %24 = arith.cmpi ne, %23, %c0_i32_12 : i32
    scf.if %24 {
      %c0_13 = arith.constant 0 : index
      %c0_14 = arith.constant 0 : index
      %25 = vector.load %arg5[%c0_13, %c0_14] : memref<1x1xf32, #tpu.memory_space<vmem>>, vector<1x1xf32>
      %c0_15 = arith.constant 0 : index
      %c0_16 = arith.constant 0 : index
      %26 = vector.load %arg4[%c0_15, %c0_16] : memref<1x1xf32, #tpu.memory_space<vmem>>, vector<1x1xf32>
      tpu.vector_store %arg4[%c0_15, %c0_16], %25 {strides = array<i32>} : memref<1x1xf32, #tpu.memory_space<vmem>>, vector<1x1xf32>,
    } else {
    }
    return
  }
  func.func @transform_0(%arg0: i32) -> (i32, i32) {
    %c0_i32 = arith.constant 0 : i32
    %c0_i32_0 = arith.constant 0 : i32
    return %arg0, %c0_i32 : i32, i32
  }
  func.func @transform_1(%arg0: i32) -> (i32, i32) {
    %c0_i32 = arith.constant 0 : i32
    %c0_i32_0 = arith.constant 0 : i32
    return %arg0, %c0_i32 : i32, i32
  }
  func.func @transform_2(%arg0: i32) -> (i32, i32) {
    %c0_i32 = arith.constant 0 : i32
    %c0_i32_0 = arith.constant 0 : i32
    return %arg0, %c0_i32 : i32, i32
  }
  func.func @transform_3(%arg0: i32) -> (i32, i32) {
    %c0_i32 = arith.constant 0 : i32
    %c0_i32_0 = arith.constant 0 : i32
    %c0_i32_1 = arith.constant 0 : i32
    return %c0_i32, %c0_i32_0 : i32, i32
  }
}

</mosaic_0001>

<bundles_post_ra>
// kernel: tpu_custom_call.1
= control target key start
LH: loop header
LB: loop body
LE: loop exit
PB: predicated region body
PF: predicated region fallthrough
CT: control target
= control target key end

     0   :  { %8 = vsyncpa [#allocation4], 0  ;;  %s289_s0 = inlined_call_operand.hbm [shape: f32[8,16], index: 0, kind: input, shape index: {}]   ;;  %s290_s1 = inlined_call_operand.hbm [shape: f32[8,16], index: 1, kind: input, shape index: {}]   ;;  %s291_s2 = inlined_call_operand.hbm [shape: f32[8,16], index: 2, kind: input, shape index: {}]   ;;  %s292_s3 = inlined_call_operand.hbm [shape: f32[1,1], index: 3, kind: output, shape index: {}]  }
   0x1   :  { %9 = vsyncpa [#allocation7], 0 }
   0x2   :  { %10 = vsyncpa [#allocation5], 0  ;;  %s213_s12 = smov [#allocation6]   ;;  %s214_s14 = smov [#allocation3]  }
   0x3   :  { %s27_s13 = sshll.u32 %s213_s12, 4  ;;  %s17_s15 = sshll.u32 %s214_s14, 4  ;;  %s28_s13 = int_to_ptr.vmem [resolvable:$true] %s27_s13  ;;  %s18_s15 = int_to_ptr.vmem [resolvable:$true] %s17_s15 }
   0x4   :  { %s119_s18 = scalar_lea.hbm %s290_s1, 128 }
   0x5   :  { %p120_p0 = scmp.ne.s32.totalorder %s290_s1, %s119_s18  ;;  %p123_p1 = scmp.lt.u32.totalorder %s119_s18, %s290_s1 }
   0x7   :  { %p125_p2 = pnand %p123_p1, %p120_p0 }
   0x9   :  { %128 = shalt.err (!%p125_p2)
}
   0xa   :  { %s129_s23 = scalar_lea.vmem %s28_s13, 128  ;;  %p134_p4 = scmp.lt.s32.totalorder %s28_s13, %s28_s13 }
   0xb   :  { %p130_p3 = scmp.ne.s32.totalorder %s28_s13, %s129_s23  ;;  %p135_p5 = scmp.lt.s32.totalorder %s129_s23, %s129_s23 }
   0xd   :  { %p136_p6 = por %p135_p5, %p134_p4 }
   0xf   :  { %p137_p7 = pnand %p136_p6, %p130_p3 }
  0x11   :  { %140 = shalt.err (!%p137_p7)
}
  0x12   :  { %30 = dma.hbm_to_vmem [thread:$0]  %s290_s1, 128, %s28_s13, [#allocation7]  }
  0x13   :  { %s141_s28 = scalar_lea.hbm %s289_s0, 128 }
  0x14   :  { %p142_p8 = scmp.ne.s32.totalorder %s289_s0, %s141_s28  ;;  %p145_p9 = scmp.lt.u32.totalorder %s141_s28, %s289_s0 }
  0x16   :  { %p147_p10 = pnand %p145_p9, %p142_p8 }
  0x18   :  { %150 = shalt.err (!%p147_p10)
}
  0x19   :  { %s151_s6 = scalar_lea.vmem %s18_s15, 128  ;;  %p156_p12 = scmp.lt.s32.totalorder %s18_s15, %s18_s15 }
  0x1a   :  { %p152_p11 = scmp.ne.s32.totalorder %s18_s15, %s151_s6  ;;  %p157_p13 = scmp.lt.s32.totalorder %s151_s6, %s151_s6 }
  0x1c   :  { %p158_p0 = por %p157_p13, %p156_p12 }
  0x1e   :  { %p159_p1 = pnand %p158_p0, %p152_p11 }
  0x20   :  { %162 = shalt.err (!%p159_p1)
}
  0x21   :  { %20 = dma.hbm_to_vmem [thread:$0]  %s289_s0, 128, %s18_s15, [#allocation4]  }
  0x22   :  { %s215_s8 = smov [#allocation8]   ;;  %s163_s12 = scalar_lea.hbm %s291_s2, 128 }
  0x23   :  { %s37_s9 = sshll.u32 %s215_s8, 4  ;;  %p164_p2 = scmp.ne.s32.totalorder %s291_s2, %s163_s12  ;;  %s38_s9 = int_to_ptr.vmem [resolvable:$true] %s37_s9 }
  0x24   :  { %p167_p3 = scmp.lt.u32.totalorder %s163_s12, %s291_s2 }
  0x26   :  { %p169_p4 = pnand %p167_p3, %p164_p2 }
  0x28   :  { %172 = shalt.err (!%p169_p4)
}
  0x29   :  { %s173_s18 = scalar_lea.vmem %s38_s9, 128  ;;  %p178_p6 = scmp.lt.s32.totalorder %s38_s9, %s38_s9 }
  0x2a   :  { %p174_p5 = scmp.ne.s32.totalorder %s38_s9, %s173_s18  ;;  %p179_p7 = scmp.lt.s32.totalorder %s173_s18, %s173_s18 }
  0x2c   :  { %p180_p8 = por %p179_p7, %p178_p6 }
  0x2e   :  { %p181_p9 = pnand %p180_p8, %p174_p5 }
  0x30   :  { %184 = shalt.err (!%p181_p9)
}
  0x31   :  { %40 = dma.hbm_to_vmem [thread:$0]  %s291_s2, 128, %s38_s9, [#allocation7]  }
  0x32   :  { %207 = dma.done.wait [#allocation4], 128  }
  0x33   :  { %208 = vsyncadd [#allocation4], 4294967168 }
  0x34   :  { %209 = dma.done.wait [#allocation7], 256  }
  0x35   :  { %210 = vsyncadd [#allocation7], 4294967040  ;;  %v57_v0 = vld [vmem:[#allocation6] sm:$0xff]  ;;  %v56_v4 = vld [vmem:[#allocation3] sm:$0xff]  ;;  %vm70_vm0 = vcmask 130048   ;;  %vm54_vm1 = vcmask 0  }
  0x36   :  { %v59_v1 = vmul.f32 1.442695, %v57_v0  ;;  %v58_v5 = vld [vmem:[#allocation8] sm:$0xff]  ;;  %v216_v14 = vmov 0.0   ;;  %s217_s19 = smov [#allocation9]  }
  0x37   :  { %v62_v6 = vsub.f32 %v56_v4, %v58_v5  ;;  %55 = vst.msk [vmem:[#allocation2] sm:$0x1] %vm54_vm1, %v216_v14  ;;  %s96_s20 = sshll.u32 %s217_s19, 4  ;;  %s97_s20 = int_to_ptr.vmem [resolvable:$true] %s96_s20 }
  0x38   :  { %113 = vpow2.f32 %v59_v1  ;;  %s185_s21 = scalar_lea.vmem %s97_s20, 16  ;;  %s189_s22 = scalar_lea.vmem %s97_s20, 32 }
  0x39   :  { %p186_p10 = scmp.ne.s32.totalorder %s97_s20, %s185_s21  ;;  %p190_p11 = scmp.lt.s32.totalorder %s97_s20, %s97_s20 }
  0x3a   :  { %p191_p12 = scmp.lt.s32.totalorder %s189_s22, %s185_s21 }
  0x3c   :  { %p192_p13 = por %p191_p12, %p190_p11 }
  0x3e   :  { %v69_v22 = vld [vmem:[#allocation2] sm:$0x1]  ;;  %p193_p0 = pnand %p192_p13, %p186_p10 }
  0x42   :  { %v114_v2 = vpop.eup %113 }
  0x43   :  { %v61_v3 = vadd.f32 1e-09, %v114_v2 }
  0x45   :  { %115 = vrcp.f32 %v61_v3 }
  0x46   :  { %117 = vlog2.f32 %v61_v3 }
  0x4f   :  { %v116_v7 = vpop.eup %115 }
  0x50   :  { %v118_v8 = vpop.eup %117  ;;  %v64_v9 = vmul.f32 %v116_v7, %v62_v6 }
  0x51   :  { %v67_v10 = vmul.f32 0.6931472, %v118_v8 }
  0x52   :  { %v65_v11 = vmul.f32 %v64_v9, %v62_v6 }
  0x54   :  { %v68_v12 = vadd.f32 %v67_v10, %v65_v11 }
  0x56   :  { %v71_v13 = vsel %vm70_vm0, %v68_v12, 0.0 }
  0x57   :  { %72 = vadd.xlane.f32.xlu0 %v71_v13 }
  0xe4   :  { %v73_v15 = vpop.xlane.xlu0 %72 }
  0xe5   :  { %v74_v16 = vrot.slane %v73_v15, 4 }
  0xe7   :  { %v75_v17 = vadd.f32 %v74_v16, %v73_v15 }
  0xe9   :  { %v76_v18 = vrot.slane %v75_v17, 2 }
  0xeb   :  { %v77_v19 = vadd.f32 %v76_v18, %v75_v17 }
  0xed   :  { %v78_v20 = vrot.slane %v77_v19, 1 }
  0xef   :  { %v79_v21 = vadd.f32 %v78_v20, %v77_v19 }
  0xf1   :  { %106 = vpush %v79_v21 }
 0x122   :  { %s107_s2 = spop %106 }
 0x123   :  { %v81_v23 = vstv %s107_s2 }
 0x124   :  { %v82_v24 = vadd.f32 %v81_v23, %v69_v22 }
 0x126   :  { %84 = vst.msk [vmem:[#allocation2] sm:$0x1] %vm54_vm1, %v82_v24 }
 0x12d   :  { %v88_v25 = vld [vmem:[#allocation2] sm:$0x1] }
 0x12e   :  { %89 = vst.msk [vmem:[#allocation9] sm:$0x1] %vm54_vm1, %v88_v25 }
 0x12f   :  { %196 = shalt.err (!%p193_p0)
}
 0x130   :  { %s197_s25 = scalar_lea.hbm %s292_s3, 16 }
 0x131   :  { %p198_p1 = scmp.ne.s32.totalorder %s292_s3, %s197_s25  ;;  %p201_p2 = scmp.lt.u32.totalorder %s197_s25, %s292_s3 }
 0x133   :  { %p203_p3 = pnand %p201_p2, %p198_p1 }
 0x135   :  { %206 = shalt.err (!%p203_p3)
}
 0x136   :  { %99 = dma.vmem_to_hbm [thread:$0]  %s97_s20, 16, %s292_s3, [#allocation5]  }
 0x137   :  { %211 = dma.done.wait [#allocation5], 16  }
 0x138   :  { %212 = vsyncadd [#allocation5], 4294967280 }
 0x139   :  { %103 = vsyncpa [#allocation4], 1 }
 0x13a   :  { %104 = vsyncpa [#allocation7], 1 }
 0x13b   :  { %105 = vsyncpa [#allocation5], 1 }

</bundles_post_ra>
